<compile_context>
chip_gen: v5e
topology: v5e:2x2
jax: 0.10.0
libtpu: 0.0.40
codegen_flags: <defaults>
</compile_context>

<pallas_src>
import functools
import math

import jax
import jax.numpy as jnp
from jax.experimental import pallas as pl
from jax.experimental.pallas import tpu as pltpu  # noqa: F401  (TPU backend import)


# ----------------------------------------------------------------------------
# Fused encoder-cell kernel (single invocation, no grid)
# ----------------------------------------------------------------------------

def _encoder_cell_kernel(x_ref, wq_ref, wk_ref, wv_ref, wfc_ref,
                         g1_ref, b1_ref,
                         w1_ref, bf1_ref, w2_ref, bf2_ref,
                         g2_ref, b2_ref,
                         o_ref, *, batch, h, inv_scale, eps):
    # TODO(synk): attention mask (mask != None path) is not implemented — only
    #             the mask=None path of the reference module is supported.
    # x_ref:            (B*S, D)   rows folded in the wrapper
    # wq/wk/wv_ref:     (h, D, d)  head-major projection weights
    # wfc_ref:          (h, d, D)  head-major output-projection weights
    BS, D = x_ref.shape
    B = batch
    S = BS // B
    d = D // h

    x = x_ref[...]                              # (BS, D), single contiguous load

    # Multi-head attention.  Heads are a static unrolled loop; each head's
    # weights are indexed on the LEADING axis (free — no lane slicing), each
    # head's attention is batched over B with 3-D leading-batch einsums, and
    # the fc projection is folded per head (pure MXU accumulation) so no
    # lane-dim concatenate is ever materialized.
    att2d = jnp.zeros((BS, D), dtype=jnp.float32)
    for hi in range(h):
        # 1/sqrt(h) scale folded into Q right after its projection.
        qh = jnp.dot(x, wq_ref[hi], preferred_element_type=jnp.float32) * inv_scale
        kh = jnp.dot(x, wk_ref[hi], preferred_element_type=jnp.float32)
        vh = jnp.dot(x, wv_ref[hi], preferred_element_type=jnp.float32)
        # (BS, d) -> (B, S, d): split of the leading/sublane axis only
        # (layout-preserving; the lane axis is untouched).
        qh = qh.reshape(B, S, d)
        kh = kh.reshape(B, S, d)
        vh = vh.reshape(B, S, d)

        s = jnp.einsum('bqd,bkd->bqk', qh, kh,
                       preferred_element_type=jnp.float32)        # (B, S, S)
        s = s - jnp.max(s, axis=-1, keepdims=True)
        p = jnp.exp(s)
        den = jnp.sum(p, axis=-1, keepdims=True)                  # (B, S, 1)

        ctx = jnp.einsum('bqk,bkd->bqd', p, vh,
                         preferred_element_type=jnp.float32)      # (B, S, d)
        # Softmax denominator applied AFTER the value matmul (flash-style);
        # approximate reciprocal runs on the EUP slot and overlaps with
        # surrounding vector work.
        ctx = ctx * pl.reciprocal(den, approx=True)

        # att @ Wfc  ==  sum over heads of ctx_h @ Wfc[h]   (MXU accumulation)
        att2d = att2d + jnp.dot(ctx.reshape(BS, d), wfc_ref[hi],
                                preferred_element_type=jnp.float32)

    # add & LayerNorm 1  (dropout = identity in eval mode)
    y = att2d + x
    mean = jnp.mean(y, axis=-1, keepdims=True)
    var = jnp.mean((y - mean) ** 2, axis=-1, keepdims=True)   # biased, like torch
    norm_att = (y - mean) * jax.lax.rsqrt(var + eps) * g1_ref[...] + b1_ref[...]

    # position-wise FFN
    hdn = jnp.dot(norm_att, w1_ref[...],
                  preferred_element_type=jnp.float32) + bf1_ref[...]
    hdn = jnp.maximum(hdn, 0.0)
    lin = jnp.dot(hdn, w2_ref[...],
                  preferred_element_type=jnp.float32) + bf2_ref[...]

    # add & LayerNorm 2
    y2 = lin + norm_att
    mean2 = jnp.mean(y2, axis=-1, keepdims=True)
    var2 = jnp.mean((y2 - mean2) ** 2, axis=-1, keepdims=True)
    out = (y2 - mean2) * jax.lax.rsqrt(var2 + eps) * g2_ref[...] + b2_ref[...]

    # single contiguous 2-D slab write of the whole layer output
    o_ref[...] = out


# ----------------------------------------------------------------------------
# Wrapper
# ----------------------------------------------------------------------------

def transformer_encoder_cell_forward(x, p, h, eps=1e-5):
    """x: (B, S, D) float32.  Returns (B, S, D) float32."""
    B, S, D = x.shape
    d = D // h

    # Head-major weight split and (B,S,D)->(B*S,D) fold happen HERE in the
    # wrapper: pure layout plumbing with zero in-kernel relayout cost.
    # (For a real model, store the weights head-major to begin with.)
    wq_h = p["wq"].reshape(D, h, d).transpose(1, 0, 2)   # (h, D, d)
    wk_h = p["wk"].reshape(D, h, d).transpose(1, 0, 2)   # (h, D, d)
    wv_h = p["wv"].reshape(D, h, d).transpose(1, 0, 2)   # (h, D, d)
    wfc_h = p["wfc"].reshape(h, d, D)                    # (h, d, D)
    x2d = x.reshape(B * S, D)

    kernel = functools.partial(
        _encoder_cell_kernel, batch=B, h=h,
        inv_scale=1.0 / math.sqrt(float(h)), eps=eps)

    # No grid, no BlockSpecs: every operand is loaded whole into VMEM and the
    # entire cell runs as one fused kernel invocation (see TODO(synk) at top
    # for the realistic-shape tiling/grid plan).
    out2d = pl.pallas_call(
        kernel,
        out_shape=jax.ShapeDtypeStruct((B * S, D), jnp.float32),
    )(x2d, wq_h, wk_h, wv_h, wfc_h,
      p["ln1_g"], p["ln1_b"],
      p["w1"], p["b1"], p["w2"], p["b2"],
      p["ln2_g"], p["ln2_b"])

    return out2d.reshape(B, S, D)


# ----------------------------------------------------------------------------
# Parameter init (PyTorch-style uniform bounds, weights pre-transposed (in,out))
# ----------------------------------------------------------------------------

def init_params(key, in_size, fc_size):
    keys = jax.random.split(key, 8)

    def lin(k, n_in, n_out):
        bound = 1.0 / math.sqrt(n_in)
        return jax.random.uniform(k, (n_in, n_out), jnp.float32, -bound, bound)

    return {
        "wq": lin(keys[0], in_size, in_size),
        "wk": lin(keys[1], in_size, in_size),
        "wv": lin(keys[2], in_size, in_size),
        "wfc": lin(keys[3], in_size, in_size),
        "w1": lin(keys[4], in_size, fc_size),
        "b1": jax.random.uniform(keys[5], (1, fc_size), jnp.float32,
                                 -1.0 / math.sqrt(in_size), 1.0 / math.sqrt(in_size)),
        "w2": lin(keys[6], fc_size, in_size),
        "b2": jax.random.uniform(keys[7], (1, in_size), jnp.float32,
                                 -1.0 / math.sqrt(fc_size), 1.0 / math.sqrt(fc_size)),
        # nn.LayerNorm defaults: weight=1, bias=0
        "ln1_g": jnp.ones((1, in_size), jnp.float32),
        "ln1_b": jnp.zeros((1, in_size), jnp.float32),
        "ln2_g": jnp.ones((1, in_size), jnp.float32),
        "ln2_b": jnp.zeros((1, in_size), jnp.float32),
    }


# ----------------------------------------------------------------------------
# Pure-JAX reference (mirrors the PyTorch module exactly, eval mode)
# ----------------------------------------------------------------------------

def reference_forward(x, p, h, eps=1e-5):
    B, S, D = x.shape
    d = D // h
    scale = math.sqrt(float(h))
    Q = (x @ p["wq"]).reshape(B, S, h, d).transpose(0, 2, 1, 3)
    K = (x @ p["wk"]).reshape(B, S, h, d).transpose(0, 2, 1, 3)
    V = (x @ p["wv"]).reshape(B, S, h, d).transpose(0, 2, 1, 3)
    alpha = jax.nn.softmax(Q @ K.transpose(0, 1, 3, 2) / scale, axis=-1)
    att = (alpha @ V).transpose(0, 2, 1, 3).reshape(B, S, D) @ p["wfc"]

    def ln(y, g, b):
        m = jnp.mean(y, -1, keepdims=True)
        v = jnp.mean((y - m) ** 2, -1, keepdims=True)
        return (y - m) / jnp.sqrt(v + eps) * g + b

    norm_att = ln(att + x, p["ln1_g"], p["ln1_b"])
    hdn = jnp.maximum(norm_att @ p["w1"] + p["b1"], 0.0)
    lin = hdn @ p["w2"] + p["b2"]
    return ln(lin + norm_att, p["ln2_g"], p["ln2_b"])


# ----------------------------------------------------------------------------
# Main
# ----------------------------------------------------------------------------

if __name__ == "__main__":
    B, S, D = 2, 8, 32      # batch, seq, in_size
    FC = 64                 # fc_size
    H = 4                   # heads

    key = jax.random.PRNGKey(0)
    k_x, k_p = jax.random.split(key)
    x = jax.random.normal(k_x, (B, S, D), jnp.float32)
    params = init_params(k_p, D, FC)

    out = transformer_encoder_cell_forward(x, params, H)
    out = jax.block_until_ready(out)

    ref = reference_forward(x, params, H)
    assert out.shape == (B, S, D)
    # Tolerance accounts for the EUP approximate reciprocal in the softmax
    # (approx=True); everything else is f32-exact.
    assert jnp.allclose(out, ref, atol=5e-3, rtol=5e-3), "mismatch vs reference"

    print("KERNEL_OK")
</pallas_src>

<mosaic_0001>
module attributes {stable_mosaic.version = 11 : i64} {
  func.func @_encoder_cell_kernel(%arg0: memref<16x32xf32, #tpu.memory_space<vmem>>, %arg1: memref<4x32x8xf32, #tpu.memory_space<vmem>>, %arg2: memref<4x32x8xf32, #tpu.memory_space<vmem>>, %arg3: memref<4x32x8xf32, #tpu.memory_space<vmem>>, %arg4: memref<4x8x32xf32, #tpu.memory_space<vmem>>, %arg5: memref<1x32xf32, #tpu.memory_space<vmem>>, %arg6: memref<1x32xf32, #tpu.memory_space<vmem>>, %arg7: memref<32x64xf32, #tpu.memory_space<vmem>>, %arg8: memref<1x64xf32, #tpu.memory_space<vmem>>, %arg9: memref<64x32xf32, #tpu.memory_space<vmem>>, %arg10: memref<1x32xf32, #tpu.memory_space<vmem>>, %arg11: memref<1x32xf32, #tpu.memory_space<vmem>>, %arg12: memref<1x32xf32, #tpu.memory_space<vmem>>, %arg13: memref<16x32xf32, #tpu.memory_space<vmem>>) attributes {dimension_semantics = [], scalar_prefetch = 0 : i64, scratch_operands = 0 : i64, tpu.core_type = #tpu.core_type<tc>} {
    %c0 = arith.constant 0 : index
    %c0_0 = arith.constant 0 : index
    %0 = vector.load %arg0[%c0, %c0_0] : memref<16x32xf32, #tpu.memory_space<vmem>>, vector<16x32xf32>
    %cst = arith.constant 0.000000e+00 : f32
    %1 = vector.broadcast %cst : f32 to vector<16x32xf32>
    %c0_1 = arith.constant 0 : index
    %c0_2 = arith.constant 0 : index
    %c0_3 = arith.constant 0 : index
    %2 = vector.load %arg1[%c0_1, %c0_2, %c0_3] : memref<4x32x8xf32, #tpu.memory_space<vmem>>, vector<1x32x8xf32>
    %3 = vector.shape_cast %2 : vector<1x32x8xf32> to vector<32x8xf32>
    %cst_4 = arith.constant dense<0.000000e+00> : vector<16x8xf32>
    %4 = tpu.matmul %0, %3, %cst_4 {dimension_numbers = #tpu.dot_dimension_numbers<[1], [0], [0], [1], [0, 0, 1, 1], [], []>} : vector<16x32xf32>, vector<32x8xf32>, vector<16x8xf32> -> vector<16x8xf32>
    %cst_5 = arith.constant 5.000000e-01 : f32
    %5 = vector.broadcast %cst_5 : f32 to vector<16x8xf32>
    %6 = arith.mulf %4, %5 : vector<16x8xf32>
    %c0_6 = arith.constant 0 : index
    %c0_7 = arith.constant 0 : index
    %c0_8 = arith.constant 0 : index
    %7 = vector.load %arg2[%c0_6, %c0_7, %c0_8] : memref<4x32x8xf32, #tpu.memory_space<vmem>>, vector<1x32x8xf32>
    %8 = vector.shape_cast %7 : vector<1x32x8xf32> to vector<32x8xf32>
    %cst_9 = arith.constant dense<0.000000e+00> : vector<16x8xf32>
    %9 = tpu.matmul %0, %8, %cst_9 {dimension_numbers = #tpu.dot_dimension_numbers<[1], [0], [0], [1], [0, 0, 1, 1], [], []>} : vector<16x32xf32>, vector<32x8xf32>, vector<16x8xf32> -> vector<16x8xf32>
    %c0_10 = arith.constant 0 : index
    %c0_11 = arith.constant 0 : index
    %c0_12 = arith.constant 0 : index
    %10 = vector.load %arg3[%c0_10, %c0_11, %c0_12] : memref<4x32x8xf32, #tpu.memory_space<vmem>>, vector<1x32x8xf32>
    %11 = vector.shape_cast %10 : vector<1x32x8xf32> to vector<32x8xf32>
    %cst_13 = arith.constant dense<0.000000e+00> : vector<16x8xf32>
    %12 = tpu.matmul %0, %11, %cst_13 {dimension_numbers = #tpu.dot_dimension_numbers<[1], [0], [0], [1], [0, 0, 1, 1], [], []>} : vector<16x32xf32>, vector<32x8xf32>, vector<16x8xf32> -> vector<16x8xf32>
    %13 = vector.shape_cast %6 : vector<16x8xf32> to vector<2x8x8xf32>
    %14 = vector.shape_cast %9 : vector<16x8xf32> to vector<2x8x8xf32>
    %15 = vector.shape_cast %12 : vector<16x8xf32> to vector<2x8x8xf32>
    "tpu.trace_start"() <{level = 10 : i32, message = "bqd,bkd->bqk"}> : () -> ()
    %cst_14 = arith.constant dense<0.000000e+00> : vector<2x8x8xf32>
    %16 = tpu.matmul %13, %14, %cst_14 {dimension_numbers = #tpu.dot_dimension_numbers<[2], [2], [1], [1], [0, 0, 0, 1, 1, 1], [0], [0]>} : vector<2x8x8xf32>, vector<2x8x8xf32>, vector<2x8x8xf32> -> vector<2x8x8xf32>
    "tpu.trace_stop"() : () -> ()
    %cst_15 = arith.constant dense<0xFF800000> : vector<2x8xf32>
    %17 = vector.multi_reduction <maximumf>, %16, %cst_15 [2] : vector<2x8x8xf32> to vector<2x8xf32>
    %18 = vector.shape_cast %17 : vector<2x8xf32> to vector<2x8x1xf32>
    %19 = vector.broadcast %18 : vector<2x8x1xf32> to vector<2x8x8xf32>
    %20 = arith.subf %16, %19 : vector<2x8x8xf32>
    %21 = math.exp %20 : vector<2x8x8xf32>
    %cst_16 = arith.constant dense<0.000000e+00> : vector<2x8xf32>
    %22 = vector.multi_reduction <add>, %21, %cst_16 [2] : vector<2x8x8xf32> to vector<2x8xf32>
    %23 = vector.shape_cast %22 : vector<2x8xf32> to vector<2x8x1xf32>
    "tpu.trace_start"() <{level = 10 : i32, message = "bqk,bkd->bqd"}> : () -> ()
    %cst_17 = arith.constant dense<0.000000e+00> : vector<2x8x8xf32>
    %24 = tpu.matmul %21, %15, %cst_17 {dimension_numbers = #tpu.dot_dimension_numbers<[2], [1], [1], [2], [0, 0, 0, 1, 1, 2], [0], [0]>} : vector<2x8x8xf32>, vector<2x8x8xf32>, vector<2x8x8xf32> -> vector<2x8x8xf32>
    "tpu.trace_stop"() : () -> ()
    %25 = tpu.reciprocal %23 {approx = true} : vector<2x8x1xf32> -> vector<2x8x1xf32>
    %26 = vector.broadcast %25 : vector<2x8x1xf32> to vector<2x8x8xf32>
    %27 = arith.mulf %24, %26 : vector<2x8x8xf32>
    %28 = vector.shape_cast %27 : vector<2x8x8xf32> to vector<16x8xf32>
    %c0_18 = arith.constant 0 : index
    %c0_19 = arith.constant 0 : index
    %c0_20 = arith.constant 0 : index
    %29 = vector.load %arg4[%c0_18, %c0_19, %c0_20] : memref<4x8x32xf32, #tpu.memory_space<vmem>>, vector<1x8x32xf32>
    %30 = vector.shape_cast %29 : vector<1x8x32xf32> to vector<8x32xf32>
    %cst_21 = arith.constant dense<0.000000e+00> : vector<16x32xf32>
    %31 = tpu.matmul %28, %30, %cst_21 {dimension_numbers = #tpu.dot_dimension_numbers<[1], [0], [0], [1], [0, 0, 1, 1], [], []>} : vector<16x8xf32>, vector<8x32xf32>, vector<16x32xf32> -> vector<16x32xf32>
    %32 = arith.addf %1, %31 : vector<16x32xf32>
    %c1 = arith.constant 1 : index
    %c0_22 = arith.constant 0 : index
    %c0_23 = arith.constant 0 : index
    %33 = vector.load %arg1[%c1, %c0_22, %c0_23] : memref<4x32x8xf32, #tpu.memory_space<vmem>>, vector<1x32x8xf32>
    %34 = vector.shape_cast %33 : vector<1x32x8xf32> to vector<32x8xf32>
    %cst_24 = arith.constant dense<0.000000e+00> : vector<16x8xf32>
    %35 = tpu.matmul %0, %34, %cst_24 {dimension_numbers = #tpu.dot_dimension_numbers<[1], [0], [0], [1], [0, 0, 1, 1], [], []>} : vector<16x32xf32>, vector<32x8xf32>, vector<16x8xf32> -> vector<16x8xf32>
    %cst_25 = arith.constant 5.000000e-01 : f32
    %36 = vector.broadcast %cst_25 : f32 to vector<16x8xf32>
    %37 = arith.mulf %35, %36 : vector<16x8xf32>
    %c1_26 = arith.constant 1 : index
    %c0_27 = arith.constant 0 : index
    %c0_28 = arith.constant 0 : index
    %38 = vector.load %arg2[%c1_26, %c0_27, %c0_28] : memref<4x32x8xf32, #tpu.memory_space<vmem>>, vector<1x32x8xf32>
    %39 = vector.shape_cast %38 : vector<1x32x8xf32> to vector<32x8xf32>
    %cst_29 = arith.constant dense<0.000000e+00> : vector<16x8xf32>
    %40 = tpu.matmul %0, %39, %cst_29 {dimension_numbers = #tpu.dot_dimension_numbers<[1], [0], [0], [1], [0, 0, 1, 1], [], []>} : vector<16x32xf32>, vector<32x8xf32>, vector<16x8xf32> -> vector<16x8xf32>
    %c1_30 = arith.constant 1 : index
    %c0_31 = arith.constant 0 : index
    %c0_32 = arith.constant 0 : index
    %41 = vector.load %arg3[%c1_30, %c0_31, %c0_32] : memref<4x32x8xf32, #tpu.memory_space<vmem>>, vector<1x32x8xf32>
    %42 = vector.shape_cast %41 : vector<1x32x8xf32> to vector<32x8xf32>
    %cst_33 = arith.constant dense<0.000000e+00> : vector<16x8xf32>
    %43 = tpu.matmul %0, %42, %cst_33 {dimension_numbers = #tpu.dot_dimension_numbers<[1], [0], [0], [1], [0, 0, 1, 1], [], []>} : vector<16x32xf32>, vector<32x8xf32>, vector<16x8xf32> -> vector<16x8xf32>
    %44 = vector.shape_cast %37 : vector<16x8xf32> to vector<2x8x8xf32>
    %45 = vector.shape_cast %40 : vector<16x8xf32> to vector<2x8x8xf32>
    %46 = vector.shape_cast %43 : vector<16x8xf32> to vector<2x8x8xf32>
    "tpu.trace_start"() <{level = 10 : i32, message = "bqd,bkd->bqk"}> : () -> ()
    %cst_34 = arith.constant dense<0.000000e+00> : vector<2x8x8xf32>
    %47 = tpu.matmul %44, %45, %cst_34 {dimension_numbers = #tpu.dot_dimension_numbers<[2], [2], [1], [1], [0, 0, 0, 1, 1, 1], [0], [0]>} : vector<2x8x8xf32>, vector<2x8x8xf32>, vector<2x8x8xf32> -> vector<2x8x8xf32>
    "tpu.trace_stop"() : () -> ()
    %cst_35 = arith.constant dense<0xFF800000> : vector<2x8xf32>
    %48 = vector.multi_reduction <maximumf>, %47, %cst_35 [2] : vector<2x8x8xf32> to vector<2x8xf32>
    %49 = vector.shape_cast %48 : vector<2x8xf32> to vector<2x8x1xf32>
    %50 = vector.broadcast %49 : vector<2x8x1xf32> to vector<2x8x8xf32>
    %51 = arith.subf %47, %50 : vector<2x8x8xf32>
    %52 = math.exp %51 : vector<2x8x8xf32>
    %cst_36 = arith.constant dense<0.000000e+00> : vector<2x8xf32>
    %53 = vector.multi_reduction <add>, %52, %cst_36 [2] : vector<2x8x8xf32> to vector<2x8xf32>
    %54 = vector.shape_cast %53 : vector<2x8xf32> to vector<2x8x1xf32>
    "tpu.trace_start"() <{level = 10 : i32, message = "bqk,bkd->bqd"}> : () -> ()
    %cst_37 = arith.constant dense<0.000000e+00> : vector<2x8x8xf32>
    %55 = tpu.matmul %52, %46, %cst_37 {dimension_numbers = #tpu.dot_dimension_numbers<[2], [1], [1], [2], [0, 0, 0, 1, 1, 2], [0], [0]>} : vector<2x8x8xf32>, vector<2x8x8xf32>, vector<2x8x8xf32> -> vector<2x8x8xf32>
    "tpu.trace_stop"() : () -> ()
    %56 = tpu.reciprocal %54 {approx = true} : vector<2x8x1xf32> -> vector<2x8x1xf32>
    %57 = vector.broadcast %56 : vector<2x8x1xf32> to vector<2x8x8xf32>
    %58 = arith.mulf %55, %57 : vector<2x8x8xf32>
    %59 = vector.shape_cast %58 : vector<2x8x8xf32> to vector<16x8xf32>
    %c1_38 = arith.constant 1 : index
    %c0_39 = arith.constant 0 : index
    %c0_40 = arith.constant 0 : index
    %60 = vector.load %arg4[%c1_38, %c0_39, %c0_40] : memref<4x8x32xf32, #tpu.memory_space<vmem>>, vector<1x8x32xf32>
    %61 = vector.shape_cast %60 : vector<1x8x32xf32> to vector<8x32xf32>
    %cst_41 = arith.constant dense<0.000000e+00> : vector<16x32xf32>
    %62 = tpu.matmul %59, %61, %cst_41 {dimension_numbers = #tpu.dot_dimension_numbers<[1], [0], [0], [1], [0, 0, 1, 1], [], []>} : vector<16x8xf32>, vector<8x32xf32>, vector<16x32xf32> -> vector<16x32xf32>
    %63 = arith.addf %32, %62 : vector<16x32xf32>
    %c2 = arith.constant 2 : index
    %c0_42 = arith.constant 0 : index
    %c0_43 = arith.constant 0 : index
    %64 = vector.load %arg1[%c2, %c0_42, %c0_43] : memref<4x32x8xf32, #tpu.memory_space<vmem>>, vector<1x32x8xf32>
    %65 = vector.shape_cast %64 : vector<1x32x8xf32> to vector<32x8xf32>
    %cst_44 = arith.constant dense<0.000000e+00> : vector<16x8xf32>
    %66 = tpu.matmul %0, %65, %cst_44 {dimension_numbers = #tpu.dot_dimension_numbers<[1], [0], [0], [1], [0, 0, 1, 1], [], []>} : vector<16x32xf32>, vector<32x8xf32>, vector<16x8xf32> -> vector<16x8xf32>
    %cst_45 = arith.constant 5.000000e-01 : f32
    %67 = vector.broadcast %cst_45 : f32 to vector<16x8xf32>
    %68 = arith.mulf %66, %67 : vector<16x8xf32>
    %c2_46 = arith.constant 2 : index
    %c0_47 = arith.constant 0 : index
    %c0_48 = arith.constant 0 : index
    %69 = vector.load %arg2[%c2_46, %c0_47, %c0_48] : memref<4x32x8xf32, #tpu.memory_space<vmem>>, vector<1x32x8xf32>
    %70 = vector.shape_cast %69 : vector<1x32x8xf32> to vector<32x8xf32>
    %cst_49 = arith.constant dense<0.000000e+00> : vector<16x8xf32>
    %71 = tpu.matmul %0, %70, %cst_49 {dimension_numbers = #tpu.dot_dimension_numbers<[1], [0], [0], [1], [0, 0, 1, 1], [], []>} : vector<16x32xf32>, vector<32x8xf32>, vector<16x8xf32> -> vector<16x8xf32>
    %c2_50 = arith.constant 2 : index
    %c0_51 = arith.constant 0 : index
    %c0_52 = arith.constant 0 : index
    %72 = vector.load %arg3[%c2_50, %c0_51, %c0_52] : memref<4x32x8xf32, #tpu.memory_space<vmem>>, vector<1x32x8xf32>
    %73 = vector.shape_cast %72 : vector<1x32x8xf32> to vector<32x8xf32>
    %cst_53 = arith.constant dense<0.000000e+00> : vector<16x8xf32>
    %74 = tpu.matmul %0, %73, %cst_53 {dimension_numbers = #tpu.dot_dimension_numbers<[1], [0], [0], [1], [0, 0, 1, 1], [], []>} : vector<16x32xf32>, vector<32x8xf32>, vector<16x8xf32> -> vector<16x8xf32>
    %75 = vector.shape_cast %68 : vector<16x8xf32> to vector<2x8x8xf32>
    %76 = vector.shape_cast %71 : vector<16x8xf32> to vector<2x8x8xf32>
    %77 = vector.shape_cast %74 : vector<16x8xf32> to vector<2x8x8xf32>
    "tpu.trace_start"() <{level = 10 : i32, message = "bqd,bkd->bqk"}> : () -> ()
    %cst_54 = arith.constant dense<0.000000e+00> : vector<2x8x8xf32>
    %78 = tpu.matmul %75, %76, %cst_54 {dimension_numbers = #tpu.dot_dimension_numbers<[2], [2], [1], [1], [0, 0, 0, 1, 1, 1], [0], [0]>} : vector<2x8x8xf32>, vector<2x8x8xf32>, vector<2x8x8xf32> -> vector<2x8x8xf32>
    "tpu.trace_stop"() : () -> ()
    %cst_55 = arith.constant dense<0xFF800000> : vector<2x8xf32>
    %79 = vector.multi_reduction <maximumf>, %78, %cst_55 [2] : vector<2x8x8xf32> to vector<2x8xf32>
    %80 = vector.shape_cast %79 : vector<2x8xf32> to vector<2x8x1xf32>
    %81 = vector.broadcast %80 : vector<2x8x1xf32> to vector<2x8x8xf32>
    %82 = arith.subf %78, %81 : vector<2x8x8xf32>
    %83 = math.exp %82 : vector<2x8x8xf32>
    %cst_56 = arith.constant dense<0.000000e+00> : vector<2x8xf32>
    %84 = vector.multi_reduction <add>, %83, %cst_56 [2] : vector<2x8x8xf32> to vector<2x8xf32>
    %85 = vector.shape_cast %84 : vector<2x8xf32> to vector<2x8x1xf32>
    "tpu.trace_start"() <{level = 10 : i32, message = "bqk,bkd->bqd"}> : () -> ()
    %cst_57 = arith.constant dense<0.000000e+00> : vector<2x8x8xf32>
    %86 = tpu.matmul %83, %77, %cst_57 {dimension_numbers = #tpu.dot_dimension_numbers<[2], [1], [1], [2], [0, 0, 0, 1, 1, 2], [0], [0]>} : vector<2x8x8xf32>, vector<2x8x8xf32>, vector<2x8x8xf32> -> vector<2x8x8xf32>
    "tpu.trace_stop"() : () -> ()
    %87 = tpu.reciprocal %85 {approx = true} : vector<2x8x1xf32> -> vector<2x8x1xf32>
    %88 = vector.broadcast %87 : vector<2x8x1xf32> to vector<2x8x8xf32>
    %89 = arith.mulf %86, %88 : vector<2x8x8xf32>
    %90 = vector.shape_cast %89 : vector<2x8x8xf32> to vector<16x8xf32>
    %c2_58 = arith.constant 2 : index
    %c0_59 = arith.constant 0 : index
    %c0_60 = arith.constant 0 : index
    %91 = vector.load %arg4[%c2_58, %c0_59, %c0_60] : memref<4x8x32xf32, #tpu.memory_space<vmem>>, vector<1x8x32xf32>
    %92 = vector.shape_cast %91 : vector<1x8x32xf32> to vector<8x32xf32>
    %cst_61 = arith.constant dense<0.000000e+00> : vector<16x32xf32>
    %93 = tpu.matmul %90, %92, %cst_61 {dimension_numbers = #tpu.dot_dimension_numbers<[1], [0], [0], [1], [0, 0, 1, 1], [], []>} : vector<16x8xf32>, vector<8x32xf32>, vector<16x32xf32> -> vector<16x32xf32>
    %94 = arith.addf %63, %93 : vector<16x32xf32>
    %c3 = arith.constant 3 : index
    %c0_62 = arith.constant 0 : index
    %c0_63 = arith.constant 0 : index
    %95 = vector.load %arg1[%c3, %c0_62, %c0_63] : memref<4x32x8xf32, #tpu.memory_space<vmem>>, vector<1x32x8xf32>
    %96 = vector.shape_cast %95 : vector<1x32x8xf32> to vector<32x8xf32>
    %cst_64 = arith.constant dense<0.000000e+00> : vector<16x8xf32>
    %97 = tpu.matmul %0, %96, %cst_64 {dimension_numbers = #tpu.dot_dimension_numbers<[1], [0], [0], [1], [0, 0, 1, 1], [], []>} : vector<16x32xf32>, vector<32x8xf32>, vector<16x8xf32> -> vector<16x8xf32>
    %cst_65 = arith.constant 5.000000e-01 : f32
    %98 = vector.broadcast %cst_65 : f32 to vector<16x8xf32>
    %99 = arith.mulf %97, %98 : vector<16x8xf32>
    %c3_66 = arith.constant 3 : index
    %c0_67 = arith.constant 0 : index
    %c0_68 = arith.constant 0 : index
    %100 = vector.load %arg2[%c3_66, %c0_67, %c0_68] : memref<4x32x8xf32, #tpu.memory_space<vmem>>, vector<1x32x8xf32>
    %101 = vector.shape_cast %100 : vector<1x32x8xf32> to vector<32x8xf32>
    %cst_69 = arith.constant dense<0.000000e+00> : vector<16x8xf32>
    %102 = tpu.matmul %0, %101, %cst_69 {dimension_numbers = #tpu.dot_dimension_numbers<[1], [0], [0], [1], [0, 0, 1, 1], [], []>} : vector<16x32xf32>, vector<32x8xf32>, vector<16x8xf32> -> vector<16x8xf32>
    %c3_70 = arith.constant 3 : index
    %c0_71 = arith.constant 0 : index
    %c0_72 = arith.constant 0 : index
    %103 = vector.load %arg3[%c3_70, %c0_71, %c0_72] : memref<4x32x8xf32, #tpu.memory_space<vmem>>, vector<1x32x8xf32>
    %104 = vector.shape_cast %103 : vector<1x32x8xf32> to vector<32x8xf32>
    %cst_73 = arith.constant dense<0.000000e+00> : vector<16x8xf32>
    %105 = tpu.matmul %0, %104, %cst_73 {dimension_numbers = #tpu.dot_dimension_numbers<[1], [0], [0], [1], [0, 0, 1, 1], [], []>} : vector<16x32xf32>, vector<32x8xf32>, vector<16x8xf32> -> vector<16x8xf32>
    %106 = vector.shape_cast %99 : vector<16x8xf32> to vector<2x8x8xf32>
    %107 = vector.shape_cast %102 : vector<16x8xf32> to vector<2x8x8xf32>
    %108 = vector.shape_cast %105 : vector<16x8xf32> to vector<2x8x8xf32>
    "tpu.trace_start"() <{level = 10 : i32, message = "bqd,bkd->bqk"}> : () -> ()
    %cst_74 = arith.constant dense<0.000000e+00> : vector<2x8x8xf32>
    %109 = tpu.matmul %106, %107, %cst_74 {dimension_numbers = #tpu.dot_dimension_numbers<[2], [2], [1], [1], [0, 0, 0, 1, 1, 1], [0], [0]>} : vector<2x8x8xf32>, vector<2x8x8xf32>, vector<2x8x8xf32> -> vector<2x8x8xf32>
    "tpu.trace_stop"() : () -> ()
    %cst_75 = arith.constant dense<0xFF800000> : vector<2x8xf32>
    %110 = vector.multi_reduction <maximumf>, %109, %cst_75 [2] : vector<2x8x8xf32> to vector<2x8xf32>
    %111 = vector.shape_cast %110 : vector<2x8xf32> to vector<2x8x1xf32>
    %112 = vector.broadcast %111 : vector<2x8x1xf32> to vector<2x8x8xf32>
    %113 = arith.subf %109, %112 : vector<2x8x8xf32>
    %114 = math.exp %113 : vector<2x8x8xf32>
    %cst_76 = arith.constant dense<0.000000e+00> : vector<2x8xf32>
    %115 = vector.multi_reduction <add>, %114, %cst_76 [2] : vector<2x8x8xf32> to vector<2x8xf32>
    %116 = vector.shape_cast %115 : vector<2x8xf32> to vector<2x8x1xf32>
    "tpu.trace_start"() <{level = 10 : i32, message = "bqk,bkd->bqd"}> : () -> ()
    %cst_77 = arith.constant dense<0.000000e+00> : vector<2x8x8xf32>
    %117 = tpu.matmul %114, %108, %cst_77 {dimension_numbers = #tpu.dot_dimension_numbers<[2], [1], [1], [2], [0, 0, 0, 1, 1, 2], [0], [0]>} : vector<2x8x8xf32>, vector<2x8x8xf32>, vector<2x8x8xf32> -> vector<2x8x8xf32>
    "tpu.trace_stop"() : () -> ()
    %118 = tpu.reciprocal %116 {approx = true} : vector<2x8x1xf32> -> vector<2x8x1xf32>
    %119 = vector.broadcast %118 : vector<2x8x1xf32> to vector<2x8x8xf32>
    %120 = arith.mulf %117, %119 : vector<2x8x8xf32>
    %121 = vector.shape_cast %120 : vector<2x8x8xf32> to vector<16x8xf32>
    %c3_78 = arith.constant 3 : index
    %c0_79 = arith.constant 0 : index
    %c0_80 = arith.constant 0 : index
    %122 = vector.load %arg4[%c3_78, %c0_79, %c0_80] : memref<4x8x32xf32, #tpu.memory_space<vmem>>, vector<1x8x32xf32>
    %123 = vector.shape_cast %122 : vector<1x8x32xf32> to vector<8x32xf32>
    %cst_81 = arith.constant dense<0.000000e+00> : vector<16x32xf32>
    %124 = tpu.matmul %121, %123, %cst_81 {dimension_numbers = #tpu.dot_dimension_numbers<[1], [0], [0], [1], [0, 0, 1, 1], [], []>} : vector<16x8xf32>, vector<8x32xf32>, vector<16x32xf32> -> vector<16x32xf32>
    %125 = arith.addf %94, %124 : vector<16x32xf32>
    %126 = arith.addf %125, %0 : vector<16x32xf32>
    %cst_82 = arith.constant dense<0.000000e+00> : vector<16xf32>
    %127 = vector.multi_reduction <add>, %126, %cst_82 [1] : vector<16x32xf32> to vector<16xf32>
    %128 = vector.shape_cast %127 : vector<16xf32> to vector<16x1xf32>
    %cst_83 = arith.constant 3.200000e+01 : f32
    %129 = vector.broadcast %cst_83 : f32 to vector<16x1xf32>
    %130 = arith.divf %128, %129 : vector<16x1xf32>
    %131 = vector.broadcast %130 : vector<16x1xf32> to vector<16x32xf32>
    %132 = arith.subf %126, %131 : vector<16x32xf32>
    %133 = arith.mulf %132, %132 : vector<16x32xf32>
    %cst_84 = arith.constant dense<0.000000e+00> : vector<16xf32>
    %134 = vector.multi_reduction <add>, %133, %cst_84 [1] : vector<16x32xf32> to vector<16xf32>
    %135 = vector.shape_cast %134 : vector<16xf32> to vector<16x1xf32>
    %cst_85 = arith.constant 3.200000e+01 : f32
    %136 = vector.broadcast %cst_85 : f32 to vector<16x1xf32>
    %137 = arith.divf %135, %136 : vector<16x1xf32>
    %138 = vector.broadcast %130 : vector<16x1xf32> to vector<16x32xf32>
    %139 = arith.subf %126, %138 : vector<16x32xf32>
    %cst_86 = arith.constant 9.99999974E-6 : f32
    %140 = vector.broadcast %cst_86 : f32 to vector<16x1xf32>
    %141 = arith.addf %137, %140 : vector<16x1xf32>
    %142 = math.rsqrt %141 : vector<16x1xf32>
    %143 = vector.broadcast %142 : vector<16x1xf32> to vector<16x32xf32>
    %144 = arith.mulf %139, %143 : vector<16x32xf32>
    %c0_87 = arith.constant 0 : index
    %c0_88 = arith.constant 0 : index
    %145 = vector.load %arg5[%c0_87, %c0_88] : memref<1x32xf32, #tpu.memory_space<vmem>>, vector<1x32xf32>
    %146 = vector.broadcast %145 : vector<1x32xf32> to vector<16x32xf32>
    %147 = arith.mulf %144, %146 : vector<16x32xf32>
    %c0_89 = arith.constant 0 : index
    %c0_90 = arith.constant 0 : index
    %148 = vector.load %arg6[%c0_89, %c0_90] : memref<1x32xf32, #tpu.memory_space<vmem>>, vector<1x32xf32>
    %149 = vector.broadcast %148 : vector<1x32xf32> to vector<16x32xf32>
    %150 = arith.addf %147, %149 : vector<16x32xf32>
    %c0_91 = arith.constant 0 : index
    %c0_92 = arith.constant 0 : index
    %151 = vector.load %arg7[%c0_91, %c0_92] : memref<32x64xf32, #tpu.memory_space<vmem>>, vector<32x64xf32>
    %cst_93 = arith.constant dense<0.000000e+00> : vector<16x64xf32>
    %152 = tpu.matmul %150, %151, %cst_93 {dimension_numbers = #tpu.dot_dimension_numbers<[1], [0], [0], [1], [0, 0, 1, 1], [], []>} : vector<16x32xf32>, vector<32x64xf32>, vector<16x64xf32> -> vector<16x64xf32>
    %c0_94 = arith.constant 0 : index
    %c0_95 = arith.constant 0 : index
    %153 = vector.load %arg8[%c0_94, %c0_95] : memref<1x64xf32, #tpu.memory_space<vmem>>, vector<1x64xf32>
    %154 = vector.broadcast %153 : vector<1x64xf32> to vector<16x64xf32>
    %155 = arith.addf %152, %154 : vector<16x64xf32>
    %cst_96 = arith.constant 0.000000e+00 : f32
    %156 = vector.broadcast %cst_96 : f32 to vector<16x64xf32>
    %157 = arith.maximumf %155, %156 : vector<16x64xf32>
    %c0_97 = arith.constant 0 : index
    %c0_98 = arith.constant 0 : index
    %158 = vector.load %arg9[%c0_97, %c0_98] : memref<64x32xf32, #tpu.memory_space<vmem>>, vector<64x32xf32>
    %cst_99 = arith.constant dense<0.000000e+00> : vector<16x32xf32>
    %159 = tpu.matmul %157, %158, %cst_99 {dimension_numbers = #tpu.dot_dimension_numbers<[1], [0], [0], [1], [0, 0, 1, 1], [], []>} : vector<16x64xf32>, vector<64x32xf32>, vector<16x32xf32> -> vector<16x32xf32>
    %c0_100 = arith.constant 0 : index
    %c0_101 = arith.constant 0 : index
    %160 = vector.load %arg10[%c0_100, %c0_101] : memref<1x32xf32, #tpu.memory_space<vmem>>, vector<1x32xf32>
    %161 = vector.broadcast %160 : vector<1x32xf32> to vector<16x32xf32>
    %162 = arith.addf %159, %161 : vector<16x32xf32>
    %163 = arith.addf %162, %150 : vector<16x32xf32>
    %cst_102 = arith.constant dense<0.000000e+00> : vector<16xf32>
    %164 = vector.multi_reduction <add>, %163, %cst_102 [1] : vector<16x32xf32> to vector<16xf32>
    %165 = vector.shape_cast %164 : vector<16xf32> to vector<16x1xf32>
    %cst_103 = arith.constant 3.200000e+01 : f32
    %166 = vector.broadcast %cst_103 : f32 to vector<16x1xf32>
    %167 = arith.divf %165, %166 : vector<16x1xf32>
    %168 = vector.broadcast %167 : vector<16x1xf32> to vector<16x32xf32>
    %169 = arith.subf %163, %168 : vector<16x32xf32>
    %170 = arith.mulf %169, %169 : vector<16x32xf32>
    %cst_104 = arith.constant dense<0.000000e+00> : vector<16xf32>
    %171 = vector.multi_reduction <add>, %170, %cst_104 [1] : vector<16x32xf32> to vector<16xf32>
    %172 = vector.shape_cast %171 : vector<16xf32> to vector<16x1xf32>
    %cst_105 = arith.constant 3.200000e+01 : f32
    %173 = vector.broadcast %cst_105 : f32 to vector<16x1xf32>
    %174 = arith.divf %172, %173 : vector<16x1xf32>
    %175 = vector.broadcast %167 : vector<16x1xf32> to vector<16x32xf32>
    %176 = arith.subf %163, %175 : vector<16x32xf32>
    %cst_106 = arith.constant 9.99999974E-6 : f32
    %177 = vector.broadcast %cst_106 : f32 to vector<16x1xf32>
    %178 = arith.addf %174, %177 : vector<16x1xf32>
    %179 = math.rsqrt %178 : vector<16x1xf32>
    %180 = vector.broadcast %179 : vector<16x1xf32> to vector<16x32xf32>
    %181 = arith.mulf %176, %180 : vector<16x32xf32>
    %c0_107 = arith.constant 0 : index
    %c0_108 = arith.constant 0 : index
    %182 = vector.load %arg11[%c0_107, %c0_108] : memref<1x32xf32, #tpu.memory_space<vmem>>, vector<1x32xf32>
    %183 = vector.broadcast %182 : vector<1x32xf32> to vector<16x32xf32>
    %184 = arith.mulf %181, %183 : vector<16x32xf32>
    %c0_109 = arith.constant 0 : index
    %c0_110 = arith.constant 0 : index
    %185 = vector.load %arg12[%c0_109, %c0_110] : memref<1x32xf32, #tpu.memory_space<vmem>>, vector<1x32xf32>
    %186 = vector.broadcast %185 : vector<1x32xf32> to vector<16x32xf32>
    %187 = arith.addf %184, %186 : vector<16x32xf32>
    %c0_111 = arith.constant 0 : index
    %c0_112 = arith.constant 0 : index
    %188 = vector.load %arg13[%c0_111, %c0_112] : memref<16x32xf32, #tpu.memory_space<vmem>>, vector<16x32xf32>
    tpu.vector_store %arg13[%c0_111, %c0_112], %187 {strides = array<i32>} : memref<16x32xf32, #tpu.memory_space<vmem>>, vector<16x32xf32>,
    return
  }
}

</mosaic_0001>

<bundles_post_ra>
// kernel: tpu_custom_call.1
= control target key start
LH: loop header
LB: loop body
LE: loop exit
PB: predicated region body
PF: predicated region fallthrough
CT: control target
= control target key end

     0   :  { %vm51_vm0 = vcmask 261120   ;;  %s1833_s0 = inlined_call_operand.vmem [shape: f32[16,32], index: 0, kind: input, shape index: {}]   ;;  %s1834_s1 = inlined_call_operand.vmem [shape: f32[4,32,8], index: 1, kind: input, shape index: {}]   ;;  %s1835_s2 = inlined_call_operand.vmem [shape: f32[4,32,8], index: 2, kind: input, shape index: {}]   ;;  %s1836_s3 = inlined_call_operand.vmem [shape: f32[4,32,8], index: 3, kind: input, shape index: {}]   ;;  %s1837_s4 = inlined_call_operand.vmem [shape: f32[4,8,32], index: 4, kind: input, shape index: {}]   ;;  %s1838_s5 = inlined_call_operand.vmem [shape: f32[1,32], index: 5, kind: input, shape index: {}]   ;;  %s1839_s6 = inlined_call_operand.vmem [shape: f32[1,32], index: 6, kind: input, shape index: {}]   ;;  %s1840_s7 = inlined_call_operand.vmem [shape: f32[32,64], index: 7, kind: input, shape index: {}]   ;;  %s1841_s8 = inlined_call_operand.vmem [shape: f32[1,64], index: 8, kind: input, shape index: {}]   ;;  %s1842_s9 = inlined_call_operand.vmem [shape: f32[64,32], index: 9, kind: input, shape index: {}]   ;;  %s1843_s10 = inlined_call_operand.vmem [shape: f32[1,32], index: 10, kind: input, shape index: {}]   ;;  %s1844_s11 = inlined_call_operand.vmem [shape: f32[1,32], index: 11, kind: input, shape index: {}]   ;;  %s1845_s12 = inlined_call_operand.vmem [shape: f32[1,32], index: 12, kind: input, shape index: {}]   ;;  %s1846_s13 = inlined_call_operand.hbm [shape: f32[16,32], index: 13, kind: output, shape index: {}]  }
   0x1   :  { %v86_v0 = vld [vmem:[%s1835_s2 + $0x18] sm:$0xff]  ;;  %v85_v2 = vld [vmem:[%s1835_s2 + $0x10] sm:$0xff]  ;;  %v84_v4 = vld [vmem:[%s1835_s2 + $0x8] sm:$0xff] }
   0x2   :  { %v50_v1 = vld [vmem:[%s1834_s1 + $0x18] sm:$0xff]  ;;  %99 = vmatpush.msra.mxu1 %v86_v0  ;;  %v49_v3 = vld [vmem:[%s1834_s1 + $0x10] sm:$0xff]  ;;  %v48_v5 = vld [vmem:[%s1834_s1 + $0x8] sm:$0xff] }
   0x3   :  { %70 = vmatpush.msra.mxu0 %v50_v1  ;;  %v83_v6 = vld [vmem:[%s1835_s2] sm:$0xff] }
   0x4   :  { %100 = vmatpush.msra.mxu1 %v85_v2  ;;  %v47_v7 = vld [vmem:[%s1834_s1] sm:$0xff] }
   0x5   :  { %71 = vmatpush.msra.mxu0 %v49_v3  ;;  %v1505_v8 = vld [vmem:[%s1833_s0] sm:$0xff] }
   0x6   :  { %101 = vmatpush.msra.mxu1 %v84_v4 }
   0x7   :  { %72 = vmatpush.msra.mxu0 %v48_v5 }
   0x8   :  { %18 = vsyncpa [#allocation3], 0  ;;  %102 = vmatpush.msra.mxu1 %v83_v6  ;;  %v1514_v9 = vld [vmem:[%s1833_s0 + $0x8] sm:$0xff]  ;;  %v113_v10 = vld [vmem:[%s1836_s3 + $0x18] sm:$0xff]  ;;  %vm137_vm1 = vcmask 64512   ;;  %vm1119_vm9 = vcmask 523264  }
   0x9   :  { %73 = vmatpush.msra.mxu0 %v47_v7  ;;  %1229 = vmatmul.msk.f32.vlgmr.msra.gmra.mxu1 %vm51_vm0, %v1505_v8  ;;  %v112_v11 = vld [vmem:[%s1836_s3 + $0x10] sm:$0xff]  ;;  %v111_v12 = vld [vmem:[%s1836_s3 + $0x8] sm:$0xff]  ;;  %v110_v13 = vld [vmem:[%s1836_s3] sm:$0xff]  ;;  %s1407_s15 = smov 8  }
   0xa   :  { %1227 = vmatmul.msk.f32.vlgmr.msra.gmra.mxu0 %vm51_vm0, %v1505_v8  ;;  %126 = vmatpush.msra.mxu2 %v113_v10  ;;  %v1248_v20 = vld [vmem:[%s1835_s2 + $0x38] sm:$0xff]  ;;  %v1247_v21 = vld [vmem:[%s1835_s2 + $0x30] sm:$0xff]  ;;  %v1246_v22 = vld [vmem:[%s1835_s2 + $0x28] sm:$0xff] }
   0xb   :  { %v1245_v23 = vld [vmem:[%s1835_s2 + $0x20] sm:$0xff]  ;;  %v1242_v24 = vld [vmem:[%s1834_s1 + $0x38] sm:$0xff]  ;;  %v1241_v25 = vld [vmem:[%s1834_s1 + $0x30] sm:$0xff] }
   0xc   :  { %127 = vmatpush.msra.mxu2 %v112_v11  ;;  %276 = vmatpush.msrb.mxu1 %v1242_v24  ;;  %v1240_v26 = vld [vmem:[%s1834_s1 + $0x28] sm:$0xff]  ;;  %v1239_v27 = vld [vmem:[%s1834_s1 + $0x20] sm:$0xff]  ;;  %v1254_v35 = vld [vmem:[%s1836_s3 + $0x38] sm:$0xff] }
   0xd   :  { %v1253_v36 = vld [vmem:[%s1836_s3 + $0x30] sm:$0xff]  ;;  %v1252_v37 = vld [vmem:[%s1836_s3 + $0x28] sm:$0xff]  ;;  %v1251_v53 = vld [vmem:[%s1836_s3 + $0x20] sm:$0xff] }
   0xe   :  { %128 = vmatpush.msra.mxu2 %v111_v12  ;;  %277 = vmatpush.msrb.mxu1 %v1241_v25  ;;  %v258_v54 = vld [vmem:[%s1837_s4] sm:$0xff]  ;;  %v1277_v5 = vld [vmem:[%s1835_s2 + $0x58] sm:$0xff]  ;;  %v1276_v6 = vld [vmem:[%s1835_s2 + $0x50] sm:$0xff] }
   0xf   :  { %v1275_v7 = vld [vmem:[%s1835_s2 + $0x48] sm:$0xff]  ;;  %v1274_v10 = vld [vmem:[%s1835_s2 + $0x40] sm:$0xff]  ;;  %v1271_v11 = vld [vmem:[%s1834_s1 + $0x58] sm:$0xff] }
  0x10   :  { %129 = vmatpush.msra.mxu2 %v110_v13  ;;  %278 = vmatpush.msrb.mxu1 %v1240_v26  ;;  %v1270_v12 = vld [vmem:[%s1834_s1 + $0x50] sm:$0xff]  ;;  %v1269_v13 = vld [vmem:[%s1834_s1 + $0x48] sm:$0xff]  ;;  %v1283_v26 = vld [vmem:[%s1836_s3 + $0x58] sm:$0xff] }
  0x11   :  { %1230 = vmatmul.msk.f32.gmra.mxu1 %vm51_vm0, %v1514_v9  ;;  %1231 = vmatmul.msk.f32.vlgmr.msra.gmra.mxu2 %vm51_vm0, %v1505_v8  ;;  %v1263_v25 = vld [vmem:[%s1837_s4 + $0x8] sm:$0xff] }
  0x12   :  { %1228 = vmatmul.msk.f32.gmra.mxu0 %vm51_vm0, %v1514_v9  ;;  %306 = vmatpush.msrb.mxu2 %v1248_v20 }
  0x13   :  { %279 = vmatpush.msrb.mxu1 %v1239_v27  ;;  %v1282_v27 = vld [vmem:[%s1836_s3 + $0x50] sm:$0xff] }
  0x14   :  { %307 = vmatpush.msrb.mxu2 %v1247_v21 }
  0x16   :  { %308 = vmatpush.msrb.mxu2 %v1246_v22 }
  0x18   :  { %309 = vmatpush.msrb.mxu2 %v1245_v23 }
  0x19   :  { %1232 = vmatmul.msk.f32.gmra.mxu2 %vm51_vm0, %v1514_v9  ;;  %1243 = vmatmul.msk.f32.vlgmr.msrb.gmra.mxu1 %vm51_vm0, %v1505_v8 }
  0x21   :  { %1249 = vmatmul.msk.f32.vlgmr.msrb.gmra.mxu2 %vm51_vm0, %v1505_v8  ;;  %1244 = vmatmul.msk.f32.gmra.mxu1 %vm51_vm0, %v1514_v9 }
  0x29   :  { %1250 = vmatmul.msk.f32.gmra.mxu2 %vm51_vm0, %v1514_v9 }
  0x86   :  { %v104_v14 = vpop.f32.mrf.mxu1 }
  0x87   :  { %v75_v15 = vpop.f32.mrf.mxu0  ;;  %1233 = vmatpush.xpose.msk.msra.mxu3 %vm137_vm1, %v104_v14  ;;  %v1268_v14 = vld [vmem:[%s1834_s1 + $0x40] sm:$0xff] }
  0x88   :  { %v81_v16 = vmul.f32 0.5, %v75_v15 }
  0x8a   :  { %1234 = vmatmul.msk.f32.vlgmr.msra.gmra.mxu3 %vm137_vm1, %v81_v16 }
  0x8e   :  { %v107_v17 = vpop.f32.mrf.mxu1 }
  0x8f   :  { %v78_v18 = vpop.f32.mrf.mxu0  ;;  %1235 = vmatpush.xpose.msk.msrb.mxu3 %vm137_vm1, %v107_v17 }
  0x90   :  { %v82_v19 = vmul.f32 0.5, %v78_v18 }
  0x92   :  { %1236 = vmatmul.msk.f32.vlgmr.msrb.gmra.mxu3 %vm137_vm1, %v82_v19 }
  0x94   :  { %v131_v28 = vpop.f32.mrf.mxu2 }
  0x95   :  { %226 = vmatpush.msra.mxu3 %v131_v28  ;;  %v1281_v28 = vld [vmem:[%s1836_s3 + $0x48] sm:$0xff] }
  0x96   :  { %v281_v46 = vpop.f32.mrf.mxu1 }
  0x97   :  { %334 = vmatpush.msrb.mxu3 %v1254_v35  ;;  %v287_v47 = vmul.f32 0.5, %v281_v46 }
  0x99   :  { %335 = vmatpush.msrb.mxu3 %v1253_v36 }
  0x9b   :  { %336 = vmatpush.msrb.mxu3 %v1252_v37 }
  0x9c   :  { %v134_v33 = vpop.f32.mrf.mxu2 }
  0x9d   :  { %249 = vmatpush.msrb.mxu0 %v134_v33  ;;  %337 = vmatpush.msrb.mxu3 %v1251_v53  ;;  %v1304_v53 = vld [vmem:[%s1835_s2 + $0x78] sm:$0xff] }
  0x9e   :  { %v284_v50 = vpop.f32.mrf.mxu1 }
  0x9f   :  { %v288_v51 = vmul.f32 0.5, %v284_v50 }
  0xa4   :  { %v311_v34 = vpop.f32.mrf.mxu2 }
  0xa5   :  { %1257 = vmatpush.xpose.msk.msra.mxu0 %vm137_vm1, %v311_v34 }
  0xac   :  { %v314_v43 = vpop.f32.mrf.mxu2 }
 0x10d   :  { %v161_v29 = vpop.f32.mrf.mxu3 }
 0x10e   :  { %v190_v32 = vsel %vm137_vm1, %v161_v29, -inf }
 0x115   :  { %v187_v30 = vpop.f32.mrf.mxu3 }
 0x116   :  { %v193_v31 = vsel %vm137_vm1, %v187_v30, -inf }
 0x117   :  { %194 = vmax.xlane.f32.xlu0 %v193_v31 }
 0x11f   :  { %191 = vmax.xlane.f32.xlu0 %v190_v32 }
 0x18a   :  { %v195_v38 = vpop.xlane.xlu0 %194 }
 0x18b   :  { %v197_v39 = vsub.f32 %v187_v30, %v195_v38  ;;  %v1280_v30 = vld [vmem:[%s1836_s3 + $0x40] sm:$0xff] }
 0x18d   :  { %v200_v40 = vmul.f32 1.442695, %v197_v39 }
 0x18f   :  { %1336 = vpow2.f32 %v200_v40 }
 0x192   :  { %v192_v41 = vpop.xlane.xlu0 %191 }
 0x193   :  { %v196_v42 = vsub.f32 %v161_v29, %v192_v41 }
 0x195   :  { %v1337_v44 = vpop.eup %1336  ;;  %v198_v45 = vmul.f32 1.442695, %v196_v42 }
 0x196   :  { %1238 = vmatmul.msk.f32.vlgmr.msrb.gmra.mxu0 %vm137_vm1, %v1337_v44  ;;  %v205_v52 = vsel %vm137_vm1, %v1337_v44, 0.0 }
 0x197   :  { %1338 = vpow2.f32 %v198_v45  ;;  %1259 = vmatpush.xpose.msk.msrb.mxu0 %vm137_vm1, %v314_v43 }
 0x19d   :  { %v1339_v48 = vpop.eup %1338 }
 0x19e   :  { %1237 = vmatmul.msk.f32.vlgmr.msra.gmra.mxu3 %vm137_vm1, %v1339_v48  ;;  %1258 = vmatmul.msk.f32.vlgmr.msra.gmra.mxu0 %vm137_vm1, %v287_v47  ;;  %v202_v49 = vsel %vm137_vm1, %v1339_v48, 0.0 }
 0x19f   :  { %203 = vadd.xlane.f32.xlu2 %v202_v49  ;;  %517 = vmatpush.msra.mxu0 %v258_v54  ;;  %v1298_v54 = vld [vmem:[%s1834_s1 + $0x78] sm:$0xff] }
 0x1a0   :  { %488 = vmatpush.msra.mxu3 %v1263_v25  ;;  %v1310_v25 = vld [vmem:[%s1836_s3 + $0x78] sm:$0xff] }
 0x1a6   :  { %1260 = vmatmul.msk.f32.vlgmr.msrb.gmra.mxu0 %vm137_vm1, %v288_v51  ;;  %1255 = vmatmul.msk.f32.vlgmr.msrb.gmra.mxu3 %vm51_vm0, %v1505_v8 }
 0x1a7   :  { %206 = vadd.xlane.f32.xlu2 %v205_v52  ;;  %600 = vmatpush.msrb.mxu3 %v1283_v26  ;;  %v1309_v26 = vld [vmem:[%s1836_s3 + $0x70] sm:$0xff] }
 0x1a9   :  { %601 = vmatpush.msrb.mxu3 %v1282_v27  ;;  %v1308_v27 = vld [vmem:[%s1836_s3 + $0x68] sm:$0xff] }
 0x1ab   :  { %602 = vmatpush.msrb.mxu3 %v1281_v28  ;;  %v1307_v28 = vld [vmem:[%s1836_s3 + $0x60] sm:$0xff] }
 0x1ad   :  { %603 = vmatpush.msrb.mxu3 %v1280_v30 }
 0x1ae   :  { %1256 = vmatmul.msk.f32.gmra.mxu3 %vm51_vm0, %v1514_v9 }
 0x212   :  { %v204_v56 = vpop.xlane.xlu2 %203 }
 0x213   :  { %v251_v55 = vpop.f32.mrf.mxu0  ;;  %1340 = vrcp.f32 %v204_v56  ;;  %v1297_v56 = vld [vmem:[%s1834_s1 + $0x70] sm:$0xff] }
 0x219   :  { %v1341_v59 = vpop.eup %1340 }
 0x21a   :  { %v207_v58 = vpop.xlane.xlu2 %206 }
 0x21b   :  { %v368_v57 = vpop.f32.mrf.mxu0  ;;  %1342 = vrcp.f32 %v207_v58 }
 0x21c   :  { %v397_v2 = vsel %vm137_vm1, %v368_v57, -inf }
 0x221   :  { %v228_v60 = vpop.f32.mrf.mxu3  ;;  %v1343_v0 = vpop.eup %1342 }
 0x222   :  { %v256_v61 = vmul.f32 %v1341_v59, %v228_v60  ;;  %v257_v1 = vmul.f32 %v1343_v0, %v251_v55  ;;  %v1303_v55 = vld [vmem:[%s1835_s2 + $0x70] sm:$0xff]  ;;  %v1296_v59 = vld [vmem:[%s1834_s1 + $0x68] sm:$0xff]  ;;  %v1301_v60 = vld [vmem:[%s1835_s2 + $0x60] sm:$0xff] }
 0x223   :  { %v394_v62 = vpop.f32.mrf.mxu0 }
 0x224   :  { %1266 = vmatmul.msk.f32.vlgmr.msra.gmra.mxu0 %vm137_vm1, %v256_v61  ;;  %v400_v63 = vsel %vm137_vm1, %v394_v62, -inf  ;;  %v1295_v61 = vld [vmem:[%s1834_s1 + $0x60] sm:$0xff] }
 0x225   :  { %401 = vmax.xlane.f32.xlu1 %v400_v63 }
 0x229   :  { %v339_v3 = vpop.f32.mrf.mxu3 }
 0x22a   :  { %433 = vmatpush.msra.mxu1 %v339_v3 }
 0x22c   :  { %1267 = vmatmul.msk.f32.gmra.mxu0 %vm137_vm1, %v257_v1  ;;  %542 = vmatpush.msrb.mxu1 %v1271_v11 }
 0x22d   :  { %398 = vmax.xlane.f32.xlu1 %v397_v2 }
 0x22e   :  { %543 = vmatpush.msrb.mxu1 %v1270_v12 }
 0x230   :  { %544 = vmatpush.msrb.mxu1 %v1269_v13 }
 0x231   :  { %v342_v4 = vpop.f32.mrf.mxu3 }
 0x232   :  { %456 = vmatpush.msra.mxu2 %v342_v4  ;;  %545 = vmatpush.msrb.mxu1 %v1268_v14 }
 0x234   :  { %572 = vmatpush.msrb.mxu2 %v1277_v5 }
 0x236   :  { %573 = vmatpush.msrb.mxu2 %v1276_v6 }
 0x238   :  { %574 = vmatpush.msrb.mxu2 %v1275_v7 }
 0x23a   :  { %575 = vmatpush.msrb.mxu2 %v1274_v10  ;;  %v1292_v10 = vld [vmem:[%s1837_s4 + $0x10] sm:$0xff] }
 0x298   :  { %v402_v15 = vpop.xlane.xlu1 %401 }
 0x299   :  { %v404_v16 = vsub.f32 %v394_v62, %v402_v15 }
 0x29b   :  { %v407_v17 = vmul.f32 1.442695, %v404_v16 }
 0x29d   :  { %1344 = vpow2.f32 %v407_v17 }
 0x2a0   :  { %v399_v18 = vpop.xlane.xlu1 %398 }
 0x2a1   :  { %v403_v19 = vsub.f32 %v368_v57, %v399_v18  ;;  %v1666_v44 = vpop.f32.mrf.mxu0  ;;  %v1302_v57 = vld [vmem:[%s1835_s2 + $0x68] sm:$0xff]  ;;  %s1215_s2 = sshll.u32 %s1846_s13, 4  ;;  %s1216_s2 = int_to_ptr.hbm [resolvable:$true] %s1215_s2 }
 0x2a3   :  { %v1345_v20 = vpop.eup %1344  ;;  %v405_v21 = vmul.f32 1.442695, %v403_v19 }
 0x2a4   :  { %1262 = vmatmul.msk.f32.vlgmr.msra.gmra.mxu2 %vm137_vm1, %v1345_v20  ;;  %v412_v22 = vsel %vm137_vm1, %v1345_v20, 0.0 }
 0x2a5   :  { %1346 = vpow2.f32 %v405_v21  ;;  %413 = vadd.xlane.f32.xlu1 %v412_v22 }
 0x2a9   :  { %v1668_v45 = vpop.f32.mrf.mxu0 }
 0x2ab   :  { %v1347_v23 = vpop.eup %1346 }
 0x2ac   :  { %1261 = vmatmul.msk.f32.vlgmr.msra.gmra.mxu1 %vm137_vm1, %v1347_v23  ;;  %1278 = vmatmul.msk.f32.vlgmr.msrb.gmra.mxu2 %vm51_vm0, %v1505_v8  ;;  %v409_v24 = vsel %vm137_vm1, %v1347_v23, 0.0 }
 0x2ad   :  { %410 = vadd.xlane.f32.xlu0 %v409_v24 }
 0x2b4   :  { %1272 = vmatmul.msk.f32.vlgmr.msrb.gmra.mxu1 %vm51_vm0, %v1505_v8  ;;  %1279 = vmatmul.msk.f32.gmra.mxu2 %vm51_vm0, %v1514_v9 }
 0x2bc   :  { %1273 = vmatmul.msk.f32.gmra.mxu1 %vm51_vm0, %v1514_v9 }
 0x318   :  { %v414_v32 = vpop.xlane.xlu1 %413 }
 0x320   :  { %v411_v29 = vpop.xlane.xlu0 %410 }
 0x321   :  { %1348 = vrcp.f32 %v411_v29 }
 0x322   :  { %1350 = vrcp.f32 %v414_v32 }
 0x327   :  { %v458_v31 = vpop.f32.mrf.mxu2  ;;  %v1349_v33 = vpop.eup %1348 }
 0x328   :  { %v1351_v37 = vpop.eup %1350 }
 0x329   :  { %v435_v34 = vpop.f32.mrf.mxu1  ;;  %v464_v39 = vmul.f32 %v1351_v37, %v458_v31 }
 0x32a   :  { %v463_v35 = vmul.f32 %v1349_v33, %v435_v34 }
 0x32c   :  { %1264 = vmatmul.msk.f32.vlgmr.msra.gmra.mxu3 %vm137_vm1, %v463_v35 }
 0x32d   :  { %811 = vmatpush.msra.mxu3 %v1304_v53 }
 0x32f   :  { %v577_v36 = vpop.f32.mrf.mxu2  ;;  %812 = vmatpush.msra.mxu3 %v1303_v55 }
 0x330   :  { %1286 = vmatpush.xpose.msk.msrb.mxu0 %vm137_vm1, %v577_v36 }
 0x331   :  { %v547_v38 = vpop.f32.mrf.mxu1  ;;  %813 = vmatpush.msra.mxu3 %v1302_v57 }
 0x332   :  { %v553_v40 = vmul.f32 0.5, %v547_v38 }
 0x333   :  { %814 = vmatpush.msra.mxu3 %v1301_v60 }
 0x334   :  { %1265 = vmatmul.msk.f32.gmra.mxu3 %vm137_vm1, %v464_v39  ;;  %1287 = vmatmul.msk.f32.vlgmr.msrb.gmra.mxu0 %vm137_vm1, %v553_v40 }
 0x337   :  { %v580_v41 = vpop.f32.mrf.mxu2 }
 0x338   :  { %1288 = vmatpush.xpose.msk.msra.mxu1 %vm137_vm1, %v580_v41 }
 0x339   :  { %v550_v42 = vpop.f32.mrf.mxu1 }
 0x33a   :  { %v554_v43 = vmul.f32 0.5, %v550_v42 }
 0x33c   :  { %1289 = vmatmul.msk.f32.vlgmr.msra.gmra.mxu1 %vm137_vm1, %v554_v43  ;;  %1284 = vmatmul.msk.f32.vlgmr.msrb.gmra.mxu3 %vm51_vm0, %v1505_v8 }
 0x33d   :  { %754 = vmatpush.msrb.mxu1 %v1292_v10 }
 0x344   :  { %1285 = vmatmul.msk.f32.gmra.mxu3 %vm51_vm0, %v1514_v9 }
 0x34c   :  { %1305 = vmatmul.msk.f32.vlgmr.msra.gmra.mxu3 %vm51_vm0, %v1505_v8 }
 0x354   :  { %1306 = vmatmul.msk.f32.gmra.mxu3 %vm51_vm0, %v1514_v9 }
 0x3af   :  { %v1672_v50 = vpop.f32.mrf.mxu3 }
 0x3b0   :  { %v520_v29 = vadd.f32 %v1666_v44, %v1672_v50 }
 0x3b1   :  { %v634_v46 = vpop.f32.mrf.mxu0 }
 0x3b2   :  { %v663_v47 = vsel %vm137_vm1, %v634_v46, -inf }
 0x3b3   :  { %664 = vmax.xlane.f32.xlu2 %v663_v47 }
 0x3b7   :  { %v1674_v51 = vpop.f32.mrf.mxu3 }
 0x3b8   :  { %v523_v32 = vadd.f32 %v1668_v45, %v1674_v51  ;;  %v1319_v51 = vld [vmem:[%s1837_s4 + $0x18] sm:$0xff] }
 0x3b9   :  { %v660_v48 = vpop.f32.mrf.mxu1 }
 0x3ba   :  { %v666_v49 = vsel %vm137_vm1, %v660_v48, -inf }
 0x3bb   :  { %667 = vmax.xlane.f32.xlu0 %v666_v49 }
 0x3bf   :  { %v605_v52 = vpop.f32.mrf.mxu3 }
 0x3c0   :  { %699 = vmatpush.msra.mxu2 %v605_v52 }
 0x3c2   :  { %781 = vmatpush.msrb.mxu2 %v1298_v54 }
 0x3c4   :  { %782 = vmatpush.msrb.mxu2 %v1297_v56 }
 0x3c6   :  { %783 = vmatpush.msrb.mxu2 %v1296_v59 }
 0x3c7   :  { %v608_v58 = vpop.f32.mrf.mxu3 }
 0x3c8   :  { %722 = vmatpush.msra.mxu0 %v608_v58  ;;  %784 = vmatpush.msrb.mxu2 %v1295_v61 }
 0x3ca   :  { %839 = vmatpush.msrb.mxu0 %v1310_v25 }
 0x3cc   :  { %840 = vmatpush.msrb.mxu0 %v1309_v26 }
 0x3ce   :  { %841 = vmatpush.msrb.mxu0 %v1308_v27 }
 0x3cf   :  { %v816_v11 = vpop.f32.mrf.mxu3 }
 0x3d0   :  { %1313 = vmatpush.xpose.msk.msra.mxu1 %vm137_vm1, %v816_v11  ;;  %842 = vmatpush.msrb.mxu0 %v1307_v28  ;;  %v1114_v28 = vld [vmem:[%s1842_s9 + $0x38] sm:$0xff] }
 0x3d1   :  { %1134 = vmatpush.msrb.mxu3 %v1114_v28 }
 0x3d7   :  { %v819_v12 = vpop.f32.mrf.mxu3 }
 0x426   :  { %v665_v62 = vpop.xlane.xlu2 %664 }
 0x427   :  { %v669_v63 = vsub.f32 %v634_v46, %v665_v62 }
 0x429   :  { %v671_v0 = vmul.f32 1.442695, %v669_v63 }
 0x42b   :  { %1352 = vpow2.f32 %v671_v0 }
 0x42e   :  { %v668_v1 = vpop.xlane.xlu0 %667 }
 0x42f   :  { %v670_v2 = vsub.f32 %v660_v48, %v668_v1 }
 0x431   :  { %v1353_v3 = vpop.eup %1352  ;;  %v673_v4 = vmul.f32 1.442695, %v670_v2 }
 0x432   :  { %1290 = vmatmul.msk.f32.vlgmr.msra.gmra.mxu2 %vm137_vm1, %v1353_v3  ;;  %v675_v5 = vsel %vm137_vm1, %v1353_v3, 0.0 }
 0x433   :  { %1354 = vpow2.f32 %v673_v4  ;;  %676 = vadd.xlane.f32.xlu1 %v675_v5  ;;  %1315 = vmatpush.xpose.msk.msra.mxu2 %vm137_vm1, %v819_v12  ;;  %v1404_v4 = vmov 32.0  }
 0x439   :  { %v1355_v6 = vpop.eup %1354 }
 0x43a   :  { %1291 = vmatmul.msk.f32.vlgmr.msra.gmra.mxu0 %vm137_vm1, %v1355_v6  ;;  %1299 = vmatmul.msk.f32.vlgmr.msrb.gmra.mxu2 %vm51_vm0, %v1505_v8  ;;  %v678_v7 = vsel %vm137_vm1, %v1355_v6, 0.0 }
 0x43b   :  { %679 = vadd.xlane.f32.xlu2 %v678_v7 }
 0x442   :  { %1300 = vmatmul.msk.f32.gmra.mxu2 %vm51_vm0, %v1514_v9  ;;  %1311 = vmatmul.msk.f32.vlgmr.msrb.gmra.mxu0 %vm51_vm0, %v1505_v8 }
 0x44a   :  { %1312 = vmatmul.msk.f32.gmra.mxu0 %vm51_vm0, %v1514_v9 }
 0x4a6   :  { %v677_v13 = vpop.xlane.xlu1 %676 }
 0x4a7   :  { %1356 = vrcp.f32 %v677_v13 }
 0x4ad   :  { %v1357_v15 = vpop.eup %1356 }
 0x4ae   :  { %v680_v14 = vpop.xlane.xlu2 %679 }
 0x4af   :  { %1358 = vrcp.f32 %v680_v14 }
 0x4b5   :  { %v701_v16 = vpop.f32.mrf.mxu2  ;;  %v1359_v19 = vpop.eup %1358 }
 0x4b6   :  { %v729_v17 = vmul.f32 %v1357_v15, %v701_v16 }
 0x4b7   :  { %v724_v18 = vpop.f32.mrf.mxu0 }
 0x4b8   :  { %1293 = vmatmul.msk.f32.vlgmr.msrb.gmra.mxu1 %vm137_vm1, %v729_v17  ;;  %v730_v21 = vmul.f32 %v1359_v19, %v724_v18 }
 0x4b9   :  { %993 = vmatpush.msrb.mxu1 %v1319_v51 }
 0x4bd   :  { %v786_v20 = vpop.f32.mrf.mxu2 }
 0x4be   :  { %v792_v23 = vmul.f32 0.5, %v786_v20 }
 0x4bf   :  { %v844_v39 = vpop.f32.mrf.mxu0 }
 0x4c0   :  { %1294 = vmatmul.msk.f32.gmra.mxu1 %vm137_vm1, %v730_v21  ;;  %938 = vmatpush.msra.mxu0 %v844_v39  ;;  %v1071_v21 = vld [vmem:[%s1840_s7 + $0x18] sm:$0xff] }
 0x4c1   :  { %1094 = vmatpush.msrb.mxu2 %v1071_v21 }
 0x4c5   :  { %v789_v22 = vpop.f32.mrf.mxu2 }
 0x4c6   :  { %v793_v24 = vmul.f32 0.5, %v789_v22  ;;  %v1070_v22 = vld [vmem:[%s1840_s7 + $0x10] sm:$0xff] }
 0x4c7   :  { %v847_v40 = vpop.f32.mrf.mxu0  ;;  %1095 = vmatpush.msrb.mxu2 %v1070_v22 }
 0x4c8   :  { %1314 = vmatmul.msk.f32.vlgmr.msra.gmra.mxu1 %vm137_vm1, %v792_v23  ;;  %1316 = vmatmul.msk.f32.vlgmr.msra.gmra.mxu2 %vm137_vm1, %v793_v24  ;;  %v1069_v23 = vld [vmem:[%s1840_s7 + $0x8] sm:$0xff]  ;;  %v1068_v24 = vld [vmem:[%s1840_s7] sm:$0xff] }
 0x4c9   :  { %961 = vmatpush.msrb.mxu0 %v847_v40  ;;  %1096 = vmatpush.msrb.mxu2 %v1069_v23 }
 0x4cb   :  { %1097 = vmatpush.msrb.mxu2 %v1068_v24 }
 0x535   :  { %v756_v30 = vpop.f32.mrf.mxu1 }
 0x536   :  { %v762_v31 = vadd.f32 %v756_v30, %v520_v29  ;;  %v1113_v29 = vld [vmem:[%s1842_s9 + $0x30] sm:$0xff]  ;;  %v1112_v30 = vld [vmem:[%s1842_s9 + $0x28] sm:$0xff] }
 0x537   :  { %1135 = vmatpush.msrb.mxu3 %v1113_v29 }
 0x539   :  { %1136 = vmatpush.msrb.mxu3 %v1112_v30 }
 0x53d   :  { %v759_v33 = vpop.f32.mrf.mxu1 }
 0x53e   :  { %v763_v34 = vadd.f32 %v759_v33, %v523_v32  ;;  %v1111_v33 = vld [vmem:[%s1842_s9 + $0x20] sm:$0xff] }
 0x53f   :  { %1137 = vmatpush.msrb.mxu3 %v1111_v33 }
 0x545   :  { %v873_v35 = vpop.f32.mrf.mxu1 }
 0x546   :  { %v902_v36 = vsel %vm137_vm1, %v873_v35, -inf }
 0x547   :  { %903 = vmax.xlane.f32.xlu0 %v902_v36  ;;  %v1110_v36 = vld [vmem:[%s1842_s9 + $0x18] sm:$0xff] }
 0x548   :  { %1138 = vmatpush.msrb.mxu3 %v1110_v36 }
 0x54b   :  { %v899_v37 = vpop.f32.mrf.mxu2 }
 0x54c   :  { %v905_v38 = vsel %vm137_vm1, %v899_v37, -inf }
 0x54d   :  { %906 = vmax.xlane.f32.xlu1 %v905_v38 }
 0x5ba   :  { %v904_v41 = vpop.xlane.xlu0 %903 }
 0x5bb   :  { %v908_v42 = vsub.f32 %v873_v35, %v904_v41 }
 0x5bd   :  { %v910_v43 = vmul.f32 1.442695, %v908_v42 }
 0x5bf   :  { %1360 = vpow2.f32 %v910_v43 }
 0x5c0   :  { %v907_v44 = vpop.xlane.xlu1 %906 }
 0x5c1   :  { %v909_v45 = vsub.f32 %v899_v37, %v907_v44  ;;  %v1330_v44 = vld [vmem:[%s1838_s5] ss:$0 sm:$0xff] }
 0x5c3   :  { %v912_v46 = vmul.f32 1.442695, %v909_v45 }
 0x5c5   :  { %v1361_v47 = vpop.eup %1360  ;;  %1362 = vpow2.f32 %v912_v46 }
 0x5c6   :  { %1317 = vmatmul.msk.f32.vlgmr.msra.gmra.mxu0 %vm137_vm1, %v1361_v47  ;;  %v914_v48 = vsel %vm137_vm1, %v1361_v47, 0.0 }
 0x5c7   :  { %915 = vadd.xlane.f32.xlu2 %v914_v48  ;;  %v1331_v48 = vld [vmem:[%s1839_s6] ss:$0 sm:$0xff] }
 0x5cb   :  { %v1363_v49 = vpop.eup %1362 }
 0x5cc   :  { %v917_v50 = vsel %vm137_vm1, %v1363_v49, 0.0 }
 0x5cd   :  { %918 = vadd.xlane.f32.xlu0 %v917_v50 }
 0x5ce   :  { %1318 = vmatmul.msk.f32.vlgmr.msrb.gmra.mxu0 %vm137_vm1, %v1363_v49 }
 0x63a   :  { %v916_v52 = vpop.xlane.xlu2 %915 }
 0x63b   :  { %1364 = vrcp.f32 %v916_v52 }
 0x640   :  { %v919_v53 = vpop.xlane.xlu0 %918 }
 0x641   :  { %v1365_v54 = vpop.eup %1364  ;;  %1366 = vrcp.f32 %v919_v53 }
 0x642   :  { %1368 = vrcp.f32 %v1404_v4  ;;  %v1333_v4 = vld [vmem:[%s1843_s10] ss:$0 sm:$0xff] }
 0x643   :  { %v940_v55 = vpop.f32.mrf.mxu0 }
 0x644   :  { %v968_v56 = vmul.f32 %v1365_v54, %v940_v55 }
 0x646   :  { %1320 = vmatmul.msk.f32.vlgmr.msrb.gmra.mxu1 %vm137_vm1, %v968_v56 }
 0x647   :  { %v1367_v57 = vpop.eup %1366 }
 0x648   :  { %v1369_v5 = vpop.eup %1368 }
 0x649   :  { %v1012_v6 = vmul.f32 32.0, %v1369_v5  ;;  %vm1016_vm2 = vweird.f32 %v1369_v5 }
 0x64b   :  { %v963_v58 = vpop.f32.mrf.mxu0  ;;  %v1013_v7 = vsub.f32 1.0, %v1012_v6 }
 0x64c   :  { %v969_v59 = vmul.f32 %v1367_v57, %v963_v58  ;;  %v1109_v58 = vld [vmem:[%s1842_s9 + $0x10] sm:$0xff] }
 0x64d   :  { %v1014_v10 = vmul.f32 %v1369_v5, %v1013_v7  ;;  %1139 = vmatpush.msrb.mxu3 %v1109_v58 }
 0x64e   :  { %1321 = vmatmul.msk.f32.gmra.mxu1 %vm137_vm1, %v969_v59  ;;  %v1108_v59 = vld [vmem:[%s1842_s9 + $0x8] sm:$0xff] }
 0x64f   :  { %v1015_v11 = vadd.f32 %v1369_v5, %v1014_v10  ;;  %1140 = vmatpush.msrb.mxu3 %v1108_v59 }
 0x651   :  { %v1756_v12 = vsel %vm1016_vm2, %v1369_v5, %v1015_v11 }
 0x6c3   :  { %v995_v60 = vpop.f32.mrf.mxu1 }
 0x6c4   :  { %v1001_v61 = vadd.f32 %v995_v60, %v762_v31  ;;  %v1107_v60 = vld [vmem:[%s1842_s9] sm:$0xff] }
 0x6c5   :  { %1141 = vmatpush.msrb.mxu3 %v1107_v60 }
 0x6c6   :  { %v1003_v62 = vadd.f32 %v1001_v61, %v1505_v8  ;;  %v1332_v61 = vld [vmem:[%s1841_s8] ss:$0 sm:$0xff] }
 0x6c8   :  { %v1005_v63 = vsel %vm51_vm0, %v1003_v62, 0.0 }
 0x6c9   :  { %1006 = vadd.xlane.f32.xlu1 %v1005_v63 }
 0x6cb   :  { %v998_v0 = vpop.f32.mrf.mxu1 }
 0x6cc   :  { %v1002_v1 = vadd.f32 %v998_v0, %v763_v34 }
 0x6ce   :  { %v1004_v2 = vadd.f32 %v1002_v1, %v1514_v9 }
 0x6d0   :  { %v1008_v3 = vsel %vm51_vm0, %v1004_v2, 0.0 }
 0x6d1   :  { %1009 = vadd.xlane.f32.xlu2 %v1008_v3 }
 0x73c   :  { %v1007_v8 = vpop.xlane.xlu1 %1006 }
 0x73d   :  { %v1018_v13 = vmul.f32 %v1756_v12, %v1007_v8 }
 0x73f   :  { %v1020_v14 = vsub.f32 %v1003_v62, %v1018_v13 }
 0x741   :  { %v1022_v15 = vmul.f32 %v1020_v14, %v1020_v14 }
 0x743   :  { %v1024_v9 = vsel %vm51_vm0, %v1022_v15, 0.0 }
 0x744   :  { %1025 = vadd.xlane.f32.xlu0 %v1024_v9  ;;  %v1010_v16 = vpop.xlane.xlu2 %1009 }
 0x745   :  { %v1019_v17 = vmul.f32 %v1756_v12, %v1010_v16 }
 0x747   :  { %v1021_v18 = vsub.f32 %v1004_v2, %v1019_v17 }
 0x749   :  { %v1023_v19 = vmul.f32 %v1021_v18, %v1021_v18 }
 0x74b   :  { %v1027_v20 = vsel %vm51_vm0, %v1023_v19, 0.0 }
 0x74c   :  { %1028 = vadd.xlane.f32.xlu1 %v1027_v20 }
 0x7b7   :  { %v1026_v25 = vpop.xlane.xlu0 %1025 }
 0x7b8   :  { %v1030_v26 = vmul.f32 %v1026_v25, %v1756_v12 }
 0x7ba   :  { %v1032_v27 = vadd.f32 1e-05, %v1030_v26 }
 0x7bc   :  { %1370 = vrsqrt.f32 %v1032_v27  ;;  %vm1040_vm4 = vweird.f32 %v1032_v27 }
 0x7bf   :  { %v1029_v31 = vpop.xlane.xlu1 %1028 }
 0x7c0   :  { %v1031_v32 = vmul.f32 %v1029_v31, %v1756_v12 }
 0x7c2   :  { %v1371_v34 = vpop.eup %1370  ;;  %v1033_v35 = vadd.f32 1e-05, %v1031_v32 }
 0x7c3   :  { %v1035_v37 = vmul.f32 %v1371_v34, %v1032_v27  ;;  %vm1041_vm3 = vweird.f32 %v1371_v34 }
 0x7c4   :  { %1372 = vrsqrt.f32 %v1033_v35  ;;  %vm1042_vm5 = vmor %vm1040_vm4, %vm1041_vm3  ;;  %vm1050_vm7 = vweird.f32 %v1033_v35 }
 0x7c5   :  { %v1036_v38 = vmul.f32 %v1371_v34, %v1035_v37 }
 0x7c7   :  { %v1037_v39 = vmul.f32 0.5, %v1036_v38  ;;  %v1334_v38 = vld [vmem:[%s1844_s11] ss:$0 sm:$0xff]  ;;  %s1405_s11 = smov [#allocation2]  }
 0x7c8   :  { %s1213_s30 = sshll.u32 %s1405_s11, 4  ;;  %s1214_s30 = int_to_ptr.vmem [resolvable:$true] %s1213_s30 }
 0x7c9   :  { %v1038_v40 = vsub.f32 1.5, %v1037_v39 }
 0x7ca   :  { %v1373_v41 = vpop.eup %1372 }
 0x7cb   :  { %v1039_v42 = vmul.f32 %v1371_v34, %v1038_v40  ;;  %v1045_v43 = vmul.f32 %v1373_v41, %v1033_v35  ;;  %vm1051_vm6 = vweird.f32 %v1373_v41 }
 0x7cc   :  { %vm1052_vm8 = vmor %vm1050_vm7, %vm1051_vm6 }
 0x7cd   :  { %v1043_v45 = vsel %vm1042_vm5, %v1371_v34, %v1039_v42  ;;  %v1046_v46 = vmul.f32 %v1373_v41, %v1045_v43 }
 0x7ce   :  { %v1054_v47 = vmul.f32 %v1043_v45, %v1020_v14 }
 0x7cf   :  { %v1047_v49 = vmul.f32 0.5, %v1046_v46 }
 0x7d0   :  { %v1060_v50 = vmul.f32 %v1330_v44, %v1054_v47 }
 0x7d1   :  { %v1048_v51 = vsub.f32 1.5, %v1047_v49 }
 0x7d2   :  { %v1066_v52 = vadd.f32 %v1331_v48, %v1060_v50 }
 0x7d3   :  { %v1049_v53 = vmul.f32 %v1373_v41, %v1048_v51 }
 0x7d4   :  { %1322 = vmatmul.msk.f32.vlgmr.msrb.gmra.mxu2 %vm51_vm0, %v1066_v52 }
 0x7d5   :  { %v1053_v54 = vsel %vm1052_vm8, %v1373_v41, %v1049_v53  ;;  %v1335_v41 = vld [vmem:[%s1845_s12] ss:$0 sm:$0xff]  ;;  %s1406_s12 = smov 128  }
 0x7d6   :  { %v1055_v55 = vmul.f32 %v1053_v54, %v1021_v18 }
 0x7d8   :  { %v1061_v56 = vmul.f32 %v1330_v44, %v1055_v55 }
 0x7da   :  { %v1067_v57 = vadd.f32 %v1331_v48, %v1061_v56 }
 0x7dc   :  { %1323 = vmatmul.msk.f32.gmra.mxu2 %vm51_vm0, %v1067_v57 }
 0x857   :  { %v1099_v62 = vpop.f32.mrf.mxu2 }
 0x858   :  { %v1100_v63 = vadd.f32 %v1332_v61, %v1099_v62 }
 0x85a   :  { %v1105_v0 = vmax.f32 %v1100_v63, 0.0 }
 0x85c   :  { %1324 = vmatmul.msk.f32.vlgmr.msrb.gmra.mxu3 %vm1119_vm9, %v1105_v0 }
 0x85f   :  { %v1102_v1 = vpop.f32.mrf.mxu2 }
 0x860   :  { %v1103_v2 = vadd.f32 %v1332_v61, %v1102_v1 }
 0x862   :  { %v1106_v3 = vmax.f32 %v1103_v2, 0.0 }
 0x864   :  { %1325 = vmatmul.msk.f32.gmra.mxu3 %vm1119_vm9, %v1106_v3 }
 0x8df   :  { %v1143_v5 = vpop.f32.mrf.mxu3 }
 0x8e0   :  { %v1144_v6 = vadd.f32 %v1333_v4, %v1143_v5 }
 0x8e2   :  { %v1149_v7 = vadd.f32 %v1144_v6, %v1066_v52 }
 0x8e4   :  { %v1151_v10 = vsel %vm51_vm0, %v1149_v7, 0.0 }
 0x8e5   :  { %1152 = vadd.xlane.f32.xlu2 %v1151_v10 }
 0x8e7   :  { %v1146_v11 = vpop.f32.mrf.mxu3 }
 0x8e8   :  { %v1147_v8 = vadd.f32 %v1333_v4, %v1146_v11 }
 0x8ea   :  { %v1150_v13 = vadd.f32 %v1147_v8, %v1067_v57 }
 0x8ec   :  { %v1154_v14 = vsel %vm51_vm0, %v1150_v13, 0.0 }
 0x8ed   :  { %1155 = vadd.xlane.f32.xlu0 %v1154_v14 }
 0x958   :  { %v1153_v15 = vpop.xlane.xlu2 %1152 }
 0x959   :  { %v1157_v9 = vmul.f32 %v1153_v15, %v1756_v12 }
 0x95b   :  { %v1159_v16 = vsub.f32 %v1149_v7, %v1157_v9 }
 0x95d   :  { %v1161_v17 = vmul.f32 %v1159_v16, %v1159_v16 }
 0x95f   :  { %v1163_v18 = vsel %vm51_vm0, %v1161_v17, 0.0 }
 0x960   :  { %v1156_v19 = vpop.xlane.xlu0 %1155  ;;  %1164 = vadd.xlane.f32.xlu1 %v1163_v18 }
 0x961   :  { %v1158_v20 = vmul.f32 %v1156_v19, %v1756_v12 }
 0x963   :  { %v1160_v21 = vsub.f32 %v1150_v13, %v1158_v20 }
 0x965   :  { %v1162_v22 = vmul.f32 %v1160_v21, %v1160_v21 }
 0x967   :  { %v1166_v23 = vsel %vm51_vm0, %v1162_v22, 0.0 }
 0x968   :  { %1167 = vadd.xlane.f32.xlu2 %v1166_v23 }
 0x9d3   :  { %v1165_v24 = vpop.xlane.xlu1 %1164 }
 0x9d4   :  { %v1169_v25 = vmul.f32 %v1165_v24, %v1756_v12 }
 0x9d6   :  { %v1171_v26 = vadd.f32 1e-05, %v1169_v25 }
 0x9d8   :  { %1374 = vrsqrt.f32 %v1171_v26  ;;  %vm1179_vm11 = vweird.f32 %v1171_v26 }
 0x9db   :  { %v1168_v27 = vpop.xlane.xlu2 %1167 }
 0x9dc   :  { %v1170_v28 = vmul.f32 %v1168_v27, %v1756_v12 }
 0x9de   :  { %v1375_v29 = vpop.eup %1374  ;;  %v1172_v30 = vadd.f32 1e-05, %v1170_v28 }
 0x9df   :  { %v1174_v31 = vmul.f32 %v1375_v29, %v1171_v26  ;;  %vm1180_vm10 = vweird.f32 %v1375_v29 }
 0x9e0   :  { %1376 = vrsqrt.f32 %v1172_v30  ;;  %vm1181_vm12 = vmor %vm1179_vm11, %vm1180_vm10  ;;  %vm1189_vm14 = vweird.f32 %v1172_v30 }
 0x9e1   :  { %v1175_v32 = vmul.f32 %v1375_v29, %v1174_v31 }
 0x9e3   :  { %v1176_v33 = vmul.f32 0.5, %v1175_v32 }
 0x9e5   :  { %v1177_v34 = vsub.f32 1.5, %v1176_v33 }
 0x9e6   :  { %v1377_v35 = vpop.eup %1376 }
 0x9e7   :  { %v1178_v36 = vmul.f32 %v1375_v29, %v1177_v34  ;;  %v1184_v37 = vmul.f32 %v1377_v35, %v1172_v30  ;;  %vm1190_vm13 = vweird.f32 %v1377_v35 }
 0x9e8   :  { %vm1191_vm15 = vmor %vm1189_vm14, %vm1190_vm13 }
 0x9e9   :  { %v1182_v39 = vsel %vm1181_vm12, %v1375_v29, %v1178_v36  ;;  %v1185_v40 = vmul.f32 %v1377_v35, %v1184_v37 }
 0x9ea   :  { %v1193_v12 = vmul.f32 %v1182_v39, %v1159_v16 }
 0x9eb   :  { %v1186_v42 = vmul.f32 0.5, %v1185_v40 }
 0x9ec   :  { %v1199_v43 = vmul.f32 %v1334_v38, %v1193_v12 }
 0x9ed   :  { %v1187_v44 = vsub.f32 1.5, %v1186_v42 }
 0x9ee   :  { %v1205_v45 = vadd.f32 %v1335_v41, %v1199_v43 }
 0x9ef   :  { %v1188_v46 = vmul.f32 %v1377_v35, %v1187_v44 }
 0x9f0   :  { %1207 = vst.msk [vmem:[#allocation2] sm:$0xff] %vm51_vm0, %v1205_v45 }
 0x9f1   :  { %v1192_v47 = vsel %vm1191_vm15, %v1377_v35, %v1188_v46 }
 0x9f2   :  { %v1194_v48 = vmul.f32 %v1192_v47, %v1160_v21 }
 0x9f4   :  { %v1200_v49 = vmul.f32 %v1334_v38, %v1194_v48 }
 0x9f6   :  { %v1206_v50 = vadd.f32 %v1335_v41, %v1200_v49 }
 0x9f8   :  { %1208 = vst.msk [vmem:[#allocation2 + $0x8] sm:$0xff] %vm51_vm0, %v1206_v50 }
 0x9f9   :  { %1221 = dma.vmem_to_hbm [thread:$0]  %s1214_s30, 256, %s1216_s2, [#allocation3], %s1406_s12, %s1406_s12, %s1407_s15  }
 0x9fa   :  { %1402 = dma.done.wait [#allocation3], 256  }
 0x9fb   :  { %1403 = vsyncadd [#allocation3], 4294967040 }
 0x9fc   :  { %1226 = vsyncpa [#allocation3], 1 }

</bundles_post_ra>
